<compile_context>
chip_gen: v5e
topology: v5e:2x2
jax: 0.10.0
libtpu: 0.0.40
codegen_flags: <defaults>
</compile_context>

<pallas_src>
import functools

import jax
import jax.numpy as jnp
from jax.experimental import pallas as pl
from jax.experimental.pallas import tpu as pltpu


# ----------------------------------------------------------------------------
# Pallas kernel: per-pixel channel mixing (the 1x1 conv)
# ----------------------------------------------------------------------------
def _conv1x1_kernel(w_ref, x_ref, o_ref, *, C):
    # w_ref: SMEM (C, C)    -- mixing matrix (W or W^-1), scalar-indexed
    # x_ref: VMEM (1, C, T) -- one batch element, T pixels in the lane dim
    # o_ref: VMEM (1, C, T)
    x = x_ref[0].astype(jnp.float32)                 # (C, T), lane-dense
    rows = []
    for co in range(C):                              # unrolled at trace time (C tiny)
        acc = w_ref[co, 0] * x[0:1, :]
        for ci in range(1, C):
            acc = acc + w_ref[co, ci] * x[ci:ci + 1, :]
        rows.append(acc)
    out = jnp.concatenate(rows, axis=0)              # (C, T) -> single store
    o_ref[0] = out.astype(o_ref.dtype)


def _pick_hw_tile(hw, max_lanes=32768):
    """Largest lane-dense tile (multiple of 128) that divides H*W; else full extent."""
    if hw % 128 != 0:
        return hw                                    # full-extent block is always legal
    t = min(hw, max_lanes)
    t = (t // 128) * 128
    while hw % t != 0:                               # terminates: 128 divides hw
        t -= 128
    return t


def conv1x1_trans(x_nchw, conv_weights, rev=False):
    """x: (N, C, H, W); conv_weights: (C, C). Matches Conv1x1Trans.forward."""
    N, C, H, W = x_nchw.shape
    HW = H * W
    # Matrix inverse for rev, done in the wrapper exactly like torch.inverse()
    # is done outside the conv in the PyTorch module (glue, not the kernel).
    mix = jnp.linalg.inv(conv_weights) if rev else conv_weights
    mix = mix.astype(jnp.float32)

    x3 = x_nchw.reshape(N, C, HW)                    # free view: HW is the contiguous minor dim
    T = _pick_hw_tile(HW)
    grid = (N, HW // T)

    out = pl.pallas_call(
        functools.partial(_conv1x1_kernel, C=C),
        out_shape=jax.ShapeDtypeStruct((N, C, HW), x_nchw.dtype),
        grid_spec=pltpu.PrefetchScalarGridSpec(
            num_scalar_prefetch=0,
            grid=grid,
            in_specs=[
                pl.BlockSpec(memory_space=pltpu.MemorySpace.SMEM),   # (C, C) weights
                pl.BlockSpec((1, C, T), lambda n, t: (n, 0, t)),
            ],
            out_specs=pl.BlockSpec((1, C, T), lambda n, t: (n, 0, t)),
        ),
        compiler_params=pltpu.CompilerParams(
            dimension_semantics=("parallel", "parallel")),
    )(mix, x3)
    return out.reshape(N, C, H, W)


# ----------------------------------------------------------------------------
# Weight construction (exactly as the PyTorch module's __init__)
# ----------------------------------------------------------------------------
def make_conv1x1_weights(channel_in=3):
    w = jnp.eye(channel_in, dtype=jnp.float32)
    w = w.at[0, :].set(jnp.array([0.299, 0.587, 0.114], jnp.float32))
    w = w.at[1, :].set(jnp.array([-0.147, -0.289, 0.436], jnp.float32))
    w = w.at[2, :].set(jnp.array([0.615, -0.515, -0.1], jnp.float32))
    return w


# ----------------------------------------------------------------------------
# Pure-JAX reference (broadcast-sum, no dot -> exact f32 semantics)
# ----------------------------------------------------------------------------
def conv1x1_trans_ref(x, conv_weights, rev=False):
    m = jnp.linalg.inv(conv_weights) if rev else conv_weights
    # out[n, o, h, w] = sum_c m[o, c] * x[n, c, h, w]
    return (m[None, :, :, None, None] * x[:, None, :, :, :]).sum(axis=2)


if __name__ == "__main__":
    key = jax.random.PRNGKey(0)

    channel_in = 3          # module default (RGB <-> YUV-style transform)
    N, H, W = 2, 16, 16

    weights = make_conv1x1_weights(channel_in)
    x = jax.random.normal(key, (N, channel_in, H, W), jnp.float32)

    # Forward (rev=False) and reverse (rev=True) passes through the kernel.
    y = conv1x1_trans(x, weights, rev=False)
    jax.block_until_ready(y)
    x_rec = conv1x1_trans(y, weights, rev=True)
    jax.block_until_ready(x_rec)

    # Reference checks.
    y_ref = conv1x1_trans_ref(x, weights, rev=False)
    x_rec_ref = conv1x1_trans_ref(y_ref, weights, rev=True)

    assert y.shape == (N, channel_in, H, W)
    assert jnp.allclose(y, y_ref, atol=1e-5, rtol=1e-5)
    assert jnp.allclose(x_rec, x_rec_ref, atol=1e-4, rtol=1e-4)
    assert jnp.allclose(x_rec, x, atol=1e-3, rtol=1e-3)   # invertibility round-trip

    print("KERNEL_OK")
</pallas_src>

<mosaic_0001>
module attributes {stable_mosaic.version = 11 : i64} {
  func.func @_conv1x1_kernel(%arg0: i32, %arg1: i32, %arg2: memref<3x3xf32, #tpu.memory_space<smem>>, %arg3: memref<1x3x256xf32, #tpu.memory_space<vmem>>, %arg4: memref<1x3x256xf32, #tpu.memory_space<vmem>>) attributes {dimension_semantics = [#tpu.dimension_semantics<parallel>, #tpu.dimension_semantics<parallel>], iteration_bounds = array<i64: 2, 1>, scalar_prefetch = 0 : i64, scratch_operands = 0 : i64, tpu.core_type = #tpu.core_type<tc>, window_params = [{transform_indices = @transform_0, window_bounds = array<i64: 3, 3>}, {transform_indices = @transform_1, window_bounds = array<i64: 1, 3, 256>}, {transform_indices = @transform_2, window_bounds = array<i64: 1, 3, 256>}]} {
    %c0 = arith.constant 0 : index
    %c0_0 = arith.constant 0 : index
    %c0_1 = arith.constant 0 : index
    %0 = vector.load %arg3[%c0, %c0_0, %c0_1] : memref<1x3x256xf32, #tpu.memory_space<vmem>>, vector<1x3x256xf32>
    %1 = vector.shape_cast %0 : vector<1x3x256xf32> to vector<3x256xf32>
    %c0_2 = arith.constant 0 : index
    %c0_3 = arith.constant 0 : index
    %2 = memref.load %arg2[%c0_2, %c0_3] : memref<3x3xf32, #tpu.memory_space<smem>>
    %3 = vector.extract_strided_slice %1 {offsets = [0, 0], sizes = [1, 256], strides = [1, 1]} : vector<3x256xf32> to vector<1x256xf32>
    %4 = vector.broadcast %2 : f32 to vector<1x256xf32>
    %5 = arith.mulf %4, %3 : vector<1x256xf32>
    %c0_4 = arith.constant 0 : index
    %c1 = arith.constant 1 : index
    %6 = memref.load %arg2[%c0_4, %c1] : memref<3x3xf32, #tpu.memory_space<smem>>
    %7 = vector.extract_strided_slice %1 {offsets = [1, 0], sizes = [1, 256], strides = [1, 1]} : vector<3x256xf32> to vector<1x256xf32>
    %8 = vector.broadcast %6 : f32 to vector<1x256xf32>
    %9 = arith.mulf %8, %7 : vector<1x256xf32>
    %10 = arith.addf %5, %9 : vector<1x256xf32>
    %c0_5 = arith.constant 0 : index
    %c2 = arith.constant 2 : index
    %11 = memref.load %arg2[%c0_5, %c2] : memref<3x3xf32, #tpu.memory_space<smem>>
    %12 = vector.extract_strided_slice %1 {offsets = [2, 0], sizes = [1, 256], strides = [1, 1]} : vector<3x256xf32> to vector<1x256xf32>
    %13 = vector.broadcast %11 : f32 to vector<1x256xf32>
    %14 = arith.mulf %13, %12 : vector<1x256xf32>
    %15 = arith.addf %10, %14 : vector<1x256xf32>
    %c1_6 = arith.constant 1 : index
    %c0_7 = arith.constant 0 : index
    %16 = memref.load %arg2[%c1_6, %c0_7] : memref<3x3xf32, #tpu.memory_space<smem>>
    %17 = vector.extract_strided_slice %1 {offsets = [0, 0], sizes = [1, 256], strides = [1, 1]} : vector<3x256xf32> to vector<1x256xf32>
    %18 = vector.broadcast %16 : f32 to vector<1x256xf32>
    %19 = arith.mulf %18, %17 : vector<1x256xf32>
    %c1_8 = arith.constant 1 : index
    %c1_9 = arith.constant 1 : index
    %20 = memref.load %arg2[%c1_8, %c1_9] : memref<3x3xf32, #tpu.memory_space<smem>>
    %21 = vector.extract_strided_slice %1 {offsets = [1, 0], sizes = [1, 256], strides = [1, 1]} : vector<3x256xf32> to vector<1x256xf32>
    %22 = vector.broadcast %20 : f32 to vector<1x256xf32>
    %23 = arith.mulf %22, %21 : vector<1x256xf32>
    %24 = arith.addf %19, %23 : vector<1x256xf32>
    %c1_10 = arith.constant 1 : index
    %c2_11 = arith.constant 2 : index
    %25 = memref.load %arg2[%c1_10, %c2_11] : memref<3x3xf32, #tpu.memory_space<smem>>
    %26 = vector.extract_strided_slice %1 {offsets = [2, 0], sizes = [1, 256], strides = [1, 1]} : vector<3x256xf32> to vector<1x256xf32>
    %27 = vector.broadcast %25 : f32 to vector<1x256xf32>
    %28 = arith.mulf %27, %26 : vector<1x256xf32>
    %29 = arith.addf %24, %28 : vector<1x256xf32>
    %c2_12 = arith.constant 2 : index
    %c0_13 = arith.constant 0 : index
    %30 = memref.load %arg2[%c2_12, %c0_13] : memref<3x3xf32, #tpu.memory_space<smem>>
    %31 = vector.extract_strided_slice %1 {offsets = [0, 0], sizes = [1, 256], strides = [1, 1]} : vector<3x256xf32> to vector<1x256xf32>
    %32 = vector.broadcast %30 : f32 to vector<1x256xf32>
    %33 = arith.mulf %32, %31 : vector<1x256xf32>
    %c2_14 = arith.constant 2 : index
    %c1_15 = arith.constant 1 : index
    %34 = memref.load %arg2[%c2_14, %c1_15] : memref<3x3xf32, #tpu.memory_space<smem>>
    %35 = vector.extract_strided_slice %1 {offsets = [1, 0], sizes = [1, 256], strides = [1, 1]} : vector<3x256xf32> to vector<1x256xf32>
    %36 = vector.broadcast %34 : f32 to vector<1x256xf32>
    %37 = arith.mulf %36, %35 : vector<1x256xf32>
    %38 = arith.addf %33, %37 : vector<1x256xf32>
    %c2_16 = arith.constant 2 : index
    %c2_17 = arith.constant 2 : index
    %39 = memref.load %arg2[%c2_16, %c2_17] : memref<3x3xf32, #tpu.memory_space<smem>>
    %40 = vector.extract_strided_slice %1 {offsets = [2, 0], sizes = [1, 256], strides = [1, 1]} : vector<3x256xf32> to vector<1x256xf32>
    %41 = vector.broadcast %39 : f32 to vector<1x256xf32>
    %42 = arith.mulf %41, %40 : vector<1x256xf32>
    %43 = arith.addf %38, %42 : vector<1x256xf32>
    %44 = tpu.concatenate %15, %29, %43 in 0 : vector<1x256xf32>, vector<1x256xf32>, vector<1x256xf32> -> vector<3x256xf32>
    %c0_18 = arith.constant 0 : index
    %c0_19 = arith.constant 0 : index
    %c0_20 = arith.constant 0 : index
    %45 = vector.load %arg4[%c0_18, %c0_19, %c0_20] : memref<1x3x256xf32, #tpu.memory_space<vmem>>, vector<1x3x256xf32>
    %46 = vector.shape_cast %45 : vector<1x3x256xf32> to vector<3x256xf32>
    %47 = vector.shape_cast %44 : vector<3x256xf32> to vector<1x3x256xf32>
    tpu.vector_store %arg4[%c0_18, %c0_19, %c0_20], %47 {strides = array<i32>} : memref<1x3x256xf32, #tpu.memory_space<vmem>>, vector<1x3x256xf32>,
    return
  }
  func.func @transform_0(%arg0: i32, %arg1: i32) -> (i32, i32) {
    %c0_i32 = arith.constant 0 : i32
    %c0_i32_0 = arith.constant 0 : i32
    %c0_i32_1 = arith.constant 0 : i32
    return %c0_i32, %c0_i32_0 : i32, i32
  }
  func.func @transform_1(%arg0: i32, %arg1: i32) -> (i32, i32, i32) {
    %c0_i32 = arith.constant 0 : i32
    %c0_i32_0 = arith.constant 0 : i32
    return %arg0, %c0_i32, %arg1 : i32, i32, i32
  }
  func.func @transform_2(%arg0: i32, %arg1: i32) -> (i32, i32, i32) {
    %c0_i32 = arith.constant 0 : i32
    %c0_i32_0 = arith.constant 0 : i32
    return %arg0, %c0_i32, %arg1 : i32, i32, i32
  }
}

</mosaic_0001>

<bundles_post_ra>
// kernel: tpu_custom_call.1
= control target key start
LH: loop header
LB: loop body
LE: loop exit
PB: predicated region body
PF: predicated region fallthrough
CT: control target
= control target key end

     0   :  { %7 = vsyncpa [#allocation3], 0  ;;  %s505_s9 = smov 0   ;;  %s507_s10 = smov 0   ;;  %s549_s0 = inlined_call_operand.vmem [shape: f32[3,3], index: 0, kind: input, shape index: {}]   ;;  %s550_s1 = inlined_call_operand.vmem [shape: f32[2,3,256], index: 1, kind: input, shape index: {}]   ;;  %s551_s2 = inlined_call_operand.vmem [shape: f32[2,3,256], index: 2, kind: output, shape index: {}]  }
   0x1   :  { %s509_s11 = smov 0  }
   0x2 LB: > { %s382_s12 = sadd.s32 4294967295, %s487_s11   ;;  %s25_s13 = sadd.s32 1, %s483_s10  ;;  %s487_s11 = sphi %s509_s11, %s13_s11   ;;  %s483_s10 = sphi %s507_s10, %s553_s10   ;;  %s479_s9 = sphi %s505_s9, %s552_s9  }
   0x3   : > { %p27_p0 = scmp.ge.s32.totalorder %s25_s13, 2  ;;  %p384_p1 = scmp.ge.s32.totalorder %s487_s11, 1 }
   0x4   : > { %p107_p2 = scmp.lt.s32.totalorder %s487_s11, 3  ;;  %p419_p4 = scmp.eq.s32.totalorder %s382_s12, 0 }
   0x5   : > { %s555_s13 = smov (%p27_p0, %s25_s13), 0  ;;  %s119_s16 = sshll.u32 %s549_s0, 4  ;;  %s120_s16 = int_to_ptr.vmem [resolvable:$true] %s119_s16 }
   0x6   : > { %p108_p3 = pnand %p384_p1, %p107_p2  ;;  %s489_s17 = smov [#allocation2]  }
   0x8   : > { %p415_p5 = pneg %p108_p3  ;;  %145 = sbr.rel (%p108_p3) target bundleno = 45 (0x2d), region = 28 }
   0xa   : > { %p416_p6 = pnand %p419_p4, %p415_p5 }
   0xc   : > { %418 = dma.vmem_to_smem (!%p416_p6), %s120_s16, 64, %s489_s17, [#allocation3]  }
   0xd   : > { %474 = dma.done.wait (%p419_p4), [#allocation3], 64  }
   0xe   : > { %476 = vsyncadd (%p419_p4), [#allocation3], 4294967232 }
   0xf   : > { %152 = sfence }
  0x10   : > { %p178_p7 = scmp.lt.s32.totalorder %s479_s9, 1  ;;  %s198_s18 = sld [smem:[#allocation2]]  ;;  %vm270_vm0 = vcmask 1040384   ;;  %vm273_vm1 = vcmask 1041408   ;;  %vm279_vm2 = vcmask 1043456  }
  0x11   : > { %s393_s19 = sld [smem:[#allocation2 + $0x1]] }
  0x12   : > { %s557_s9 = smov (!%p178_p7, %s479_s9), 1  ;;  %s395_s20 = sld [smem:[#allocation2 + $0x2]] }
  0x13   : > { %s409_s21 = sshll.u32 %s557_s9, 3  ;;  %s397_s22 = sld [smem:[#allocation2 + $0x80]] }
  0x14   : > { %s185_s25 = scalar_lea.vmem %s550_s1, %s409_s21  ;;  %s398_s26 = sld [smem:[#allocation2 + $0x81]] }
  0x15   : > { %v197_v0 = vld [vmem:[%s185_s25] sm:$0x77]  ;;  %s400_s27 = sld [smem:[#allocation2 + $0x82]]  ;;  %s195_s5 = scalar_lea.vmem %s551_s2, %s409_s21 }
  0x16   : > { %v199_v1 = vstv %s198_s18  ;;  %s402_s28 = sld [smem:[#allocation2 + $0x100]] }
  0x17   : > { %v202_v2 = vstv %s393_s19  ;;  %v200_v3 = vmul.f32 %v199_v1, %v197_v0  ;;  %s403_s29 = sld [smem:[#allocation2 + $0x101]] }
  0x18   : > { %v203_v4 = vmul.f32 %v202_v2, %v197_v0  ;;  %v210_v5 = vstv %s395_s20  ;;  %s405_s30 = sld [smem:[#allocation2 + $0x102]] }
  0x19   : > { %v211_v7 = vmul.f32 %v210_v5, %v197_v0  ;;  %v218_v8 = vstv %s397_s22 }
  0x1a   : > { %v394_v6 = vrot.slane %v203_v4, 9  ;;  %v221_v11 = vstv %s398_s26  ;;  %v219_v12 = vmul.f32 %v218_v8, %v197_v0 }
  0x1b   : > { %v396_v10 = vrot.slane %v211_v7, 10  ;;  %v222_v13 = vmul.f32 %v221_v11, %v197_v0  ;;  %v229_v14 = vstv %s400_s27 }
  0x1c   : > { %v208_v9 = vadd.f32 %v394_v6, %v200_v3  ;;  %v230_v15 = vmul.f32 %v229_v14, %v197_v0  ;;  %v237_v16 = vstv %s402_s28 }
  0x1d   : > { %v399_v18 = vrot.slane %v222_v13, 9  ;;  %v240_v19 = vstv %s403_s29  ;;  %v238_v21 = vmul.f32 %v237_v16, %v197_v0 }
  0x1e   : > { %v216_v17 = vadd.f32 %v396_v10, %v208_v9  ;;  %v401_v20 = vrot.slane %v230_v15, 10  ;;  %v241_v22 = vmul.f32 %v240_v19, %v197_v0  ;;  %v248_v23 = vstv %s405_s30 }
  0x1f   : > { %v227_v24 = vadd.f32 %v399_v18, %v219_v12  ;;  %v249_v25 = vmul.f32 %v248_v23, %v197_v0 }
  0x20   : > { %v404_v26 = vrot.slane %v241_v22, 9  ;;  %v256_v29 = vperm.slane %v216_v17, 0  ;;  %v257_v30 = vperm.slane %v216_v17, 4 }
  0x21   : > { %v235_v27 = vadd.f32 %v401_v20, %v227_v24  ;;  %v406_v28 = vrot.slane %v249_v25, 10 }
  0x22   : > { %v246_v31 = vadd.f32 %v404_v26, %v238_v21 }
  0x23   : > { %v261_v32 = vperm.slane %v235_v27, 0  ;;  %v262_v33 = vperm.slane %v235_v27, 4 }
  0x24   : > { %v254_v34 = vadd.f32 %v406_v28, %v246_v31 }
  0x25   : > { %v271_v35 = vsel %vm270_vm0, %v256_v29, %v261_v32  ;;  %v272_v36 = vsel %vm270_vm0, %v257_v30, %v262_v33 }
  0x26   : > { %v266_v37 = vperm.slane %v254_v34, 0  ;;  %v267_v38 = vperm.slane %v254_v34, 4 }
  0x28   : > { %v274_v39 = vsel %vm273_vm1, %v271_v35, %v266_v37  ;;  %v275_v40 = vsel %vm273_vm1, %v272_v36, %v267_v38 }
  0x29   : > { %v278_v41 = vrot.slane %v275_v40, 4 }
  0x2b   : > { %v280_v42 = vsel %vm279_vm2, %v274_v39, %v278_v41 }
  0x2c   : > { %282 = vst [vmem:[%s195_s5] sm:$0x77] %v280_v42 }
  0x2d PF: > { %s13_s11 = sadd.s32 1, %s487_s11   ;;  %s552_s9 = smov %s483_s10 }
  0x2e   : > { %p10_p8 = scmp.ge.s32.totalorder %s13_s11, 4   ;;  %s553_s10 = smov %s555_s13 }
  0x30   :  { %12 = sbr.rel (!%p10_p8) target bundleno = 2 (0x2), region = 63 }
  0x35   :  { %313 = vsyncpa [#allocation3], 1 }
  0x36   :  { %315 = vsyncpa [#allocation3 + $0x1], 1 }

</bundles_post_ra>
